<compile_context>
chip_gen: v5e
topology: v5e:2x2
jax: 0.10.0
libtpu: 0.0.40
codegen_flags: <defaults>
</compile_context>

<pallas_src>
import jax
import jax.numpy as jnp
from jax.experimental import pallas as pl
from jax.experimental.pallas import tpu as pltpu


def _identity_kernel(x_ref, o_ref):
    # Straight copy of the current VMEM tile (output HBM buffer aliases input).
    o_ref[...] = x_ref[...]


_LANE_CHOICES = (4096, 2048, 1024, 512, 256, 128)

# Per-buffer tile target. With 2 input + 2 output double-buffers this keeps the
# working set <= ~8 MiB of VMEM: inside v5e's 16 MiB scoped default and well
# under v7x's 32 MiB scoped / 64 MiB physical budget (no vmem_limit override).
_TARGET_TILE_BYTES = 2 * 1024 * 1024

# Below this size the pallas_call launch + pipeline prologue/epilogue dwarfs
# the copy; a true identity needs no data movement, so just return x.
_FAST_PATH_BYTES = 1 * 1024 * 1024


def _choose_cols(n):
    """Widest lane-dense last dim (multiple of 128) that divides n exactly."""
    for c in _LANE_CHOICES:
        if n % c == 0:
            return c
    return None


def identity(x, *, force_kernel=False):
    """Pallas identity: y = x, preserving shape and dtype."""
    orig_shape = x.shape
    n = x.size
    if n == 0:
        return x
    itemsize = jnp.dtype(x.dtype).itemsize

    if not force_kernel and n * itemsize < _FAST_PATH_BYTES:
        # Fast path: identity needs no kernel at all for small tensors.
        return x

    flat = x.reshape(-1)

    # Lane-dense 2D view: avoid jnp.pad + trailing slice (each is an extra
    # full-tensor HBM copy) whenever the element count divides a 128-multiple.
    cols = _choose_cols(n)
    padded_n = n
    if cols is None:
        # Ragged tail fallback: pad to a lane-dense multiple, slice after copy.
        cols = 1024
        padded_n = ((n + cols - 1) // cols) * cols
        flat = jnp.pad(flat, (0, padded_n - n))
    rows = padded_n // cols

    if rows >= 16:
        # Tile the sublane (row) axis: ~2 MiB per tile to amortize the
        # ~0.35 us/step overhead, and cap at rows//2 so the grid has >= 2
        # parallel blocks (keeps both v7x TensorCores busy).
        tile_rows = max(8, (_TARGET_TILE_BYTES // (cols * itemsize)) // 8 * 8)
        half_rows = max(8, (rows // 2) // 8 * 8)
        tile_rows = min(tile_rows, half_rows)
    else:
        # Small arrays: single full-array block (exempt from the (8,128) rule).
        tile_rows = rows
    grid = (pl.cdiv(rows, tile_rows),)

    y2d = pl.pallas_call(
        _identity_kernel,
        out_shape=jax.ShapeDtypeStruct((rows, cols), flat.dtype),
        grid=grid,
        in_specs=[pl.BlockSpec((tile_rows, cols), lambda i: (i, 0))],
        out_specs=pl.BlockSpec((tile_rows, cols), lambda i: (i, 0)),
        # Reuse the input HBM buffer for the output: no separate output
        # allocation / write stream to a fresh buffer.
        input_output_aliases={0: 0},
        compiler_params=pltpu.CompilerParams(
            dimension_semantics=("parallel",),
        ),
    )(flat.reshape(rows, cols))

    out = y2d.reshape(-1)
    if padded_n != n:
        out = out[:n]
    return out.reshape(orig_shape)


if __name__ == "__main__":
    key = jax.random.PRNGKey(0)
    # Small NCHW input consistent with an MNIST-style module.
    x = jax.random.normal(key, (2, 4, 16, 16), dtype=jnp.float32)

    # Kernel path (forced; tiny inputs otherwise take the zero-copy fast path).
    y = identity(x, force_kernel=True)
    jax.block_until_ready(y)
    assert y.shape == x.shape, (y.shape, x.shape)
    assert y.dtype == x.dtype, (y.dtype, x.dtype)
    assert bool(jnp.all(y == x)), "identity kernel output mismatch"

    # Fast path keeps identity semantics with no kernel launch.
    y_fast = identity(x)
    assert bool(jnp.all(y_fast == x)), "identity fast-path mismatch"

    # Multi-tile path: rows >= 16 -> row axis tiled, grid >= 2 parallel blocks.
    x_big = jax.random.normal(key, (8, 8, 32, 32), dtype=jnp.float32)
    y_big = identity(x_big, force_kernel=True)
    jax.block_until_ready(y_big)
    assert bool(jnp.all(y_big == x_big)), "identity tiled-path mismatch"

    # Ragged element count exercises the pad-then-slice fallback.
    x_rag = jax.random.normal(key, (3, 5, 7), dtype=jnp.float32)
    y_rag = identity(x_rag, force_kernel=True)
    jax.block_until_ready(y_rag)
    assert bool(jnp.all(y_rag == x_rag)), "identity ragged-path mismatch"

    print("KERNEL_OK")
</pallas_src>

<mosaic_0001>
module attributes {stable_mosaic.version = 11 : i64} {
  func.func @_identity_kernel(%arg0: i32, %arg1: memref<1x2048xf32, #tpu.memory_space<vmem>>, %arg2: memref<1x2048xf32, #tpu.memory_space<vmem>>) attributes {dimension_semantics = [#tpu.dimension_semantics<parallel>], iteration_bounds = array<i64: 1>, scalar_prefetch = 0 : i64, scratch_operands = 0 : i64, tpu.core_type = #tpu.core_type<tc>, window_params = [{transform_indices = @transform_0, window_bounds = array<i64: 1, 2048>}, {transform_indices = @transform_1, window_bounds = array<i64: 1, 2048>}]} {
    %c0 = arith.constant 0 : index
    %c0_0 = arith.constant 0 : index
    %0 = vector.load %arg1[%c0, %c0_0] : memref<1x2048xf32, #tpu.memory_space<vmem>>, vector<1x2048xf32>
    %c0_1 = arith.constant 0 : index
    %c0_2 = arith.constant 0 : index
    %1 = vector.load %arg2[%c0_1, %c0_2] : memref<1x2048xf32, #tpu.memory_space<vmem>>, vector<1x2048xf32>
    tpu.vector_store %arg2[%c0_1, %c0_2], %0 {strides = array<i32>} : memref<1x2048xf32, #tpu.memory_space<vmem>>, vector<1x2048xf32>,
    return
  }
  func.func @transform_0(%arg0: i32) -> (i32, i32) {
    %c0_i32 = arith.constant 0 : i32
    %c0_i32_0 = arith.constant 0 : i32
    return %arg0, %c0_i32 : i32, i32
  }
  func.func @transform_1(%arg0: i32) -> (i32, i32) {
    %c0_i32 = arith.constant 0 : i32
    %c0_i32_0 = arith.constant 0 : i32
    return %arg0, %c0_i32 : i32, i32
  }
}

</mosaic_0001>

<bundles_post_ra>
// kernel: tpu_custom_call.1
= control target key start
LH: loop header
LB: loop body
LE: loop exit
PB: predicated region body
PF: predicated region fallthrough
CT: control target
= control target key end

     0   :  { %6 = vsyncpa [#allocation3], 0  ;;  %s116_s0 = inlined_call_operand.hbm [shape: f32[1,2048], index: 0, kind: input, shape index: {}, may-alias: {0,1}]   ;;  %s117_s1 = inlined_call_operand.hbm [shape: f32[1,2048], index: 1, kind: output, shape index: {}, may-alias: {0,1}]  }
   0x1   :  { %7 = vsyncpa [#allocation4], 0  ;;  %s13_s8 = sshll.u32 %s116_s0, 4  ;;  %s98_s9 = smov [#allocation2]   ;;  %s14_s8 = int_to_ptr.hbm [resolvable:$true] %s13_s8 }
   0x2   :  { %s15_s10 = sshll.u32 %s98_s9, 4  ;;  %s16_s10 = int_to_ptr.vmem [resolvable:$true] %s15_s10 }
   0x3   :  { %18 = dma.hbm_to_vmem [thread:$0]  %s14_s8, 256, %s16_s10, [#allocation3]  }
   0x4   :  { %94 = dma.done.wait [#allocation3], 256  }
   0x5   :  { %95 = vsyncadd [#allocation3], 4294967040  ;;  %s99_s11 = smov [#allocation5]   ;;  %s34_s15 = sshll.u32 %s117_s1, 4  ;;  %v23_v0 = vld [vmem:[#allocation2] sm:$0xff]  ;;  %v24_v1 = vld [vmem:[#allocation2 + $0x8] sm:$0xff]  ;;  %s35_s15 = int_to_ptr.hbm [resolvable:$true] %s34_s15 }
   0x6   :  { %s32_s12 = sshll.u32 %s99_s11, 4  ;;  %25 = vst [vmem:[#allocation5] sm:$0xff] %v23_v0  ;;  %s33_s12 = int_to_ptr.vmem [resolvable:$true] %s32_s12 }
   0x7   :  { %26 = vst [vmem:[#allocation5 + $0x8] sm:$0xff] %v24_v1 }
   0x8   :  { %37 = dma.vmem_to_hbm [thread:$0]  %s33_s12, 256, %s35_s15, [#allocation4]  }
   0x9   :  { %96 = dma.done.wait [#allocation4], 256  }
   0xa   :  { %97 = vsyncadd [#allocation4], 4294967040 }
   0xb   :  { %42 = vsyncpa [#allocation3], 1 }
   0xc   :  { %43 = vsyncpa [#allocation4], 1 }

</bundles_post_ra>
